<compile_context>
chip_gen: v5e
topology: v5e:2x2
jax: 0.10.0
libtpu: 0.0.40
codegen_flags: <defaults>
</compile_context>

<pallas_src>
import functools

import jax
import jax.numpy as jnp
from jax import lax
from jax.experimental import pallas as pl
from jax.experimental.pallas import tpu as pltpu


# ----------------------------------------------------------------------------
# Pallas kernel: batched tiled matmul fused with per-output-channel affine
# (folded BatchNorm + bias) and activation.
# ----------------------------------------------------------------------------
def _epilogue(y, scale, shift, activation):
    y = y * scale + shift
    if activation == "leaky_relu":
        y = jnp.where(y >= 0.0, y, 0.2 * y)
    elif activation == "relu":
        y = jnp.maximum(y, 0.0)
    elif activation == "tanh":
        y = jnp.tanh(y)
    return y


def _fused_matmul_kernel(a_ref, b_ref, scale_ref, shift_ref, o_ref,
                         acc_ref=None, *, activation, n_k):
    if n_k == 1:
        # Single-K fast path: no f32 accumulator zero / read-modify-write.
        y = jnp.dot(a_ref[...], b_ref[...], preferred_element_type=jnp.float32)
        o_ref[...] = _epilogue(y, scale_ref[...], shift_ref[...],
                               activation).astype(o_ref.dtype)
        return

    k = pl.program_id(3)

    @pl.when(k == 0)
    def _():
        acc_ref[...] = jnp.zeros_like(acc_ref)

    acc_ref[...] += jnp.dot(a_ref[...], b_ref[...],
                            preferred_element_type=jnp.float32)

    @pl.when(k == n_k - 1)
    def _():
        o_ref[...] = _epilogue(acc_ref[...], scale_ref[...], shift_ref[...],
                               activation).astype(o_ref.dtype)


def _round_up(x, m):
    return (x + m - 1) // m * m


def _pick_tile(dim, max_tile, granule):
    """Largest block <= max_tile that exactly divides `dim` (multiple of
    `granule`), or the full dim if small.  Padding fallback only when no
    exact divisor exists (never hit by this network's shapes)."""
    if dim <= max_tile:
        return dim, dim                      # full-dim block, no padding
    t = (max_tile // granule) * granule
    while t >= granule:
        if dim % t == 0:
            return t, dim
        t -= granule
    t = (max_tile // granule) * granule
    return t, _round_up(dim, t)


def fused_matmul(a, b, scale, shift, activation, out_dtype,
                 tm_max=512, tn_max=256, tk_max=8192):
    """a: (G, M, K) bf16, b: (G, K, N) bf16, scale/shift: (N,) f32.
    Returns act((a @ b) * scale + shift) as (G, M, N) in out_dtype."""
    if a.dtype != jnp.bfloat16:
        a = a.astype(jnp.bfloat16)
    if b.dtype != jnp.bfloat16:
        b = b.astype(jnp.bfloat16)
    G, M, K = a.shape
    _, _, N = b.shape

    tm, Mp = _pick_tile(M, tm_max, 16)     # bf16 packs 16 rows / sublane group
    tn, Np = _pick_tile(N, tn_max, 128)    # lane granularity
    tk, Kp = _pick_tile(K, tk_max, 128)

    if Mp != M or Kp != K:
        a = jnp.pad(a, ((0, 0), (0, Mp - M), (0, Kp - K)))
    if Kp != K or Np != N:
        b = jnp.pad(b, ((0, 0), (0, Kp - K), (0, Np - N)))
    if Np != N:
        scale = jnp.pad(scale, (0, Np - N))
        shift = jnp.pad(shift, (0, Np - N))
    scale = scale.reshape(1, Np).astype(jnp.float32)
    shift = shift.reshape(1, Np).astype(jnp.float32)

    n_k = Kp // tk
    kernel = functools.partial(_fused_matmul_kernel,
                               activation=activation, n_k=n_k)
    scratch = [] if n_k == 1 else [pltpu.VMEM((tm, tn), jnp.float32)]

    out = pl.pallas_call(
        kernel,
        out_shape=jax.ShapeDtypeStruct((G, Mp, Np), out_dtype),
        grid_spec=pltpu.PrefetchScalarGridSpec(
            num_scalar_prefetch=0,
            grid=(G, Mp // tm, Np // tn, n_k),
            in_specs=[
                pl.BlockSpec((None, tm, tk), lambda g, i, j, k: (g, i, k)),
                pl.BlockSpec((None, tk, tn), lambda g, i, j, k: (g, k, j)),
                pl.BlockSpec((1, tn), lambda g, i, j, k: (0, j)),
                pl.BlockSpec((1, tn), lambda g, i, j, k: (0, j)),
            ],
            out_specs=pl.BlockSpec((None, tm, tn), lambda g, i, j, k: (g, i, j)),
            scratch_shapes=scratch,
        ),
        compiler_params=pltpu.CompilerParams(
            dimension_semantics=("parallel", "parallel", "parallel",
                                 "arbitrary"),
            vmem_limit_bytes=48 * 1024 * 1024),
    )(a, b, scale, shift)
    if Mp != M or Np != N:
        out = out[:, :M, :N]
    return out


# ----------------------------------------------------------------------------
# Weight packing (done once, outside the jitted forward)
# ----------------------------------------------------------------------------
# For output parity py: output row 2t+py reads input rows {t+py-1, t+py}
# paired with kernel rows _KROWS[py] (same structure along columns).
_KROWS = ((3, 1), (2, 0))


def pack_down_weight(weight):
    """Conv2d weight (cout, cin, 4, 4) -> im2col B (16*cin, cout) bf16.
    Row order: (ky*4 + kx)*cin + ci  (tap-major, channel minor)."""
    cout = weight.shape[0]
    return weight.transpose(2, 3, 1, 0).reshape(-1, cout).astype(jnp.bfloat16)


def pack_up_weight(weight):
    """ConvTranspose2d weight (cin, cout, 4, 4) -> per-parity B
    (4, 4*cin, cout) bf16; parity g = py*2+px, row order (u*2+v)*cin + ci."""
    cin, cout = weight.shape[0], weight.shape[1]
    mats = []
    for py in range(2):
        for px in range(2):
            wsub = jnp.take(jnp.take(weight, jnp.array(_KROWS[py]), axis=2),
                            jnp.array(_KROWS[px]), axis=3)   # (cin, cout, 2, 2)
            mats.append(wsub.transpose(2, 3, 0, 1).reshape(4 * cin, cout))
    return jnp.stack(mats, axis=0).astype(jnp.bfloat16)


def fold_affine(p, cout):
    """Fold inference BatchNorm + conv bias into per-channel scale/shift."""
    bias = p["bias"].astype(jnp.float32)
    if "gamma" in p:
        s = (p["gamma"] / jnp.sqrt(p["var"] + 1e-5)).astype(jnp.float32)
        return s, ((bias - p["mean"]) * s + p["beta"]).astype(jnp.float32)
    return jnp.ones((cout,), jnp.float32), bias


def pack_generator_params(raw):
    packed = {"encoders": [], "decoders": []}
    for p in raw["encoders"]:
        cout = p["weight"].shape[0]
        scale, shift = fold_affine(p, cout)
        packed["encoders"].append(
            {"B": pack_down_weight(p["weight"]), "scale": scale, "shift": shift})
    for p in raw["decoders"]:
        cout = p["weight"].shape[1]
        scale, shift = fold_affine(p, cout)
        packed["decoders"].append(
            {"B": pack_up_weight(p["weight"]), "scale": scale, "shift": shift})
    p = raw["final"]
    cout = p["weight"].shape[1]
    scale, shift = fold_affine(p, cout)
    packed["final"] = {"B": pack_up_weight(p["weight"]),
                       "scale": scale, "shift": shift}
    return packed


# ----------------------------------------------------------------------------
# Convolutions lowered to the fused matmul kernel (NHWC, channel-last im2col)
# ----------------------------------------------------------------------------
def conv_down(x, b_mat, scale, shift, activation, out_dtype):
    """Conv2d(k=4, s=2, p=1) + per-channel affine + activation.  x: NHWC bf16."""
    n, h, w, c = x.shape
    ho, wo = h // 2, w // 2
    cout = b_mat.shape[-1]
    xp = jnp.pad(x, ((0, 0), (1, 1), (1, 1), (0, 0)))
    # Channel-last strided slices concatenated on the lane axis: no transpose.
    cols = jnp.concatenate(
        [xp[:, ky:ky + 2 * ho:2, kx:kx + 2 * wo:2, :]
         for ky in range(4) for kx in range(4)], axis=-1)
    a = cols.reshape(n * ho * wo, 16 * c)
    y = fused_matmul(a[None], b_mat[None], scale, shift, activation, out_dtype)[0]
    return y.reshape(n, ho, wo, cout)


def conv_up(xs, b_mats, scale, shift, activation, out_dtype):
    """ConvTranspose2d(k=4, s=2, p=1) + affine + activation, NHWC.

    `xs` is a list of NHWC inputs treated as channel-concatenated (skip-concat
    fused into the im2col build).  Decomposed into 4 output-parity sub-convs
    (2x2 taps each), batched on the leading grid dim."""
    n, h, w, _ = xs[0].shape
    cout = b_mats.shape[-1]
    xps = [jnp.pad(x, ((0, 0), (1, 1), (1, 1), (0, 0))) for x in xs]
    planes = []
    for py in range(2):
        for px in range(2):
            taps = [xp[:, py + u:py + u + h, px + v:px + v + w, :]
                    for u in range(2) for v in range(2) for xp in xps]
            cols = jnp.concatenate(taps, axis=-1)          # (n, h, w, 4*cin)
            planes.append(cols.reshape(n * h * w, -1))
    a = jnp.stack(planes, axis=0)                          # (4, n*h*w, 4*cin)
    y = fused_matmul(a, b_mats, scale, shift, activation, out_dtype)
    y = y.reshape(2, 2, n, h, w, cout)                     # (py, px, n, t, s, co)
    # Parity interleave permutes only sublane-and-above dims (channels stay
    # on lanes).
    return y.transpose(2, 3, 0, 4, 1, 5).reshape(n, 2 * h, 2 * w, cout)


# ----------------------------------------------------------------------------
# Generator forward (packed params; NCHW in/out for PyTorch parity)
# ----------------------------------------------------------------------------
def generator_forward(params, x):
    x = jnp.transpose(x, (0, 2, 3, 1)).astype(jnp.bfloat16)   # NHWC, bf16
    skips = []
    for p in params["encoders"]:
        x = conv_down(x, p["B"], p["scale"], p["shift"],
                      "leaky_relu", jnp.bfloat16)
        skips.append(x)
    skips = list(reversed(skips[:-1]))
    # TODO(synk): the reference concatenates *before* each decoder, which is
    # shape-inconsistent; standard pix2pix decode-then-concat is used here,
    # with the concat fused into the next decoder's im2col.
    xs = [x]
    for p, skip in zip(params["decoders"], skips):
        y = conv_up(xs, p["B"], p["scale"], p["shift"], "relu", jnp.bfloat16)
        xs = [y, skip]
    p = params["final"]
    y = conv_up(xs, p["B"], p["scale"], p["shift"], "tanh", jnp.float32)
    return jnp.transpose(y, (0, 3, 1, 2))                  # back to NCHW


# ----------------------------------------------------------------------------
# Deterministic synthetic parameters (raw, torch-layout)
# ----------------------------------------------------------------------------
def _init_block(key, cin, cout, upsample, batchnorm):
    ks = jax.random.split(key, 6)
    wshape = (cin, cout, 4, 4) if upsample else (cout, cin, 4, 4)
    p = {
        "weight": 0.05 * jax.random.normal(ks[0], wshape, jnp.float32),
        "bias": 0.05 * jax.random.normal(ks[1], (cout,), jnp.float32),
    }
    if batchnorm:
        p["gamma"] = 1.0 + 0.05 * jax.random.normal(ks[2], (cout,), jnp.float32)
        p["beta"] = 0.05 * jax.random.normal(ks[3], (cout,), jnp.float32)
        p["mean"] = 0.05 * jax.random.normal(ks[4], (cout,), jnp.float32)
        p["var"] = jnp.abs(jax.random.normal(ks[5], (cout,), jnp.float32)) + 0.5
    return p


def init_generator_params(key, in_channels, out_channels):
    enc_specs = [(in_channels, 64), (64, 128), (128, 256), (256, 512),
                 (512, 512), (512, 512), (512, 512), (512, 512)]
    # Decoder in-channels derived from the actual decode-then-concat flow.
    dec_specs = [(512, 512), (1024, 512), (1024, 512), (1024, 256),
                 (768, 128), (384, 64)]
    final_in = 192
    keys = jax.random.split(key, len(enc_specs) + len(dec_specs) + 1)
    encoders = [_init_block(keys[i], ci, co, upsample=False, batchnorm=True)
                for i, (ci, co) in enumerate(enc_specs)]
    decoders = [_init_block(keys[len(enc_specs) + i], ci, co,
                            upsample=True, batchnorm=True)
                for i, (ci, co) in enumerate(dec_specs)]
    final = _init_block(keys[-1], final_in, out_channels,
                        upsample=True, batchnorm=False)
    return {"encoders": encoders, "decoders": decoders, "final": final}


# ----------------------------------------------------------------------------
# References for self-checks
# ----------------------------------------------------------------------------
def _ref_conv_down(x, w, b):
    y = lax.conv_general_dilated(
        x, w, window_strides=(2, 2), padding=((1, 1), (1, 1)),
        dimension_numbers=("NCHW", "OIHW", "NCHW"),
        precision=lax.Precision.HIGHEST)
    return y + b[None, :, None, None]


def _ref_conv_up(x, w, b):
    wc = jnp.flip(w, axis=(2, 3)).transpose(1, 0, 2, 3)
    y = lax.conv_general_dilated(
        x, wc, window_strides=(1, 1), padding=((2, 2), (2, 2)),
        lhs_dilation=(2, 2), dimension_numbers=("NCHW", "OIHW", "NCHW"),
        precision=lax.Precision.HIGHEST)
    return y + b[None, :, None, None]


# ----------------------------------------------------------------------------
if __name__ == "__main__":
    # --- lowering correctness checks (bf16-rounded inputs on both sides)
    kc = jax.random.split(jax.random.PRNGKey(1), 8)
    xc = jax.random.normal(kc[0], (1, 8, 16, 16), jnp.float32)
    wd = 0.1 * jax.random.normal(kc[1], (16, 8, 4, 4), jnp.float32)
    bd = 0.1 * jax.random.normal(kc[2], (16,), jnp.float32)
    wu = 0.1 * jax.random.normal(kc[3], (8, 12, 4, 4), jnp.float32)
    bu = 0.1 * jax.random.normal(kc[4], (12,), jnp.float32)

    x_nhwc = jnp.transpose(xc, (0, 2, 3, 1)).astype(jnp.bfloat16)
    xb = xc.astype(jnp.bfloat16).astype(jnp.float32)
    wdb = wd.astype(jnp.bfloat16).astype(jnp.float32)
    wub = wu.astype(jnp.bfloat16).astype(jnp.float32)

    got_d = conv_down(x_nhwc, pack_down_weight(wd),
                      jnp.ones((16,), jnp.float32), bd, "none", jnp.float32)
    got_d = jnp.transpose(got_d, (0, 3, 1, 2))
    assert float(jnp.max(jnp.abs(got_d - _ref_conv_down(xb, wdb, bd)))) < 5e-2

    got_u = conv_up([x_nhwc], pack_up_weight(wu),
                    jnp.ones((12,), jnp.float32), bu, "none", jnp.float32)
    got_u = jnp.transpose(got_u, (0, 3, 1, 2))
    assert float(jnp.max(jnp.abs(got_u - _ref_conv_up(xb, wub, bu)))) < 5e-2

    # --- full generator run
    key = jax.random.PRNGKey(0)
    kp, kx = jax.random.split(key)
    in_channels, out_channels = 3, 3
    raw_params = init_generator_params(kp, in_channels, out_channels)
    params = pack_generator_params(raw_params)   # one-time bf16 B packing

    # 8 stride-2 encoders require spatial >= 256 (bottleneck reaches 1x1).
    x = jax.random.normal(kx, (1, in_channels, 256, 256), jnp.float32)

    fwd = jax.jit(generator_forward)
    y = fwd(params, x)
    jax.block_until_ready(y)

    assert y.shape == (1, out_channels, 128, 128), y.shape
    assert bool(jnp.all(jnp.isfinite(y)))
    assert bool(jnp.all(jnp.abs(y) <= 1.0 + 1e-5))   # tanh range
    print("KERNEL_OK")
</pallas_src>

<mosaic_0001>
module attributes {stable_mosaic.version = 11 : i64} {
  func.func @_fused_matmul_kernel(%arg0: i32, %arg1: i32, %arg2: i32, %arg3: i32, %arg4: memref<1x64x128xbf16, #tpu.memory_space<vmem>>, %arg5: memref<1x128x16xbf16, #tpu.memory_space<vmem>>, %arg6: memref<1x16xf32, #tpu.memory_space<vmem>>, %arg7: memref<1x16xf32, #tpu.memory_space<vmem>>, %arg8: memref<1x64x16xf32, #tpu.memory_space<vmem>>) attributes {dimension_semantics = [#tpu.dimension_semantics<parallel>, #tpu.dimension_semantics<parallel>, #tpu.dimension_semantics<parallel>, #tpu.dimension_semantics<arbitrary>], iteration_bounds = array<i64: 1, 1, 1, 1>, scalar_prefetch = 0 : i64, scratch_operands = 0 : i64, tpu.core_type = #tpu.core_type<tc>, window_params = [{transform_indices = @transform_0, window_bounds = array<i64: 1, 64, 128>}, {transform_indices = @transform_1, window_bounds = array<i64: 1, 128, 16>}, {transform_indices = @transform_2, window_bounds = array<i64: 1, 16>}, {transform_indices = @transform_3, window_bounds = array<i64: 1, 16>}, {transform_indices = @transform_4, window_bounds = array<i64: 1, 64, 16>}]} {
    %c0 = arith.constant 0 : index
    %c0_0 = arith.constant 0 : index
    %c0_1 = arith.constant 0 : index
    %0 = vector.load %arg4[%c0, %c0_0, %c0_1] : memref<1x64x128xbf16, #tpu.memory_space<vmem>>, vector<1x64x128xbf16>
    %1 = vector.shape_cast %0 : vector<1x64x128xbf16> to vector<64x128xbf16>
    %c0_2 = arith.constant 0 : index
    %c0_3 = arith.constant 0 : index
    %c0_4 = arith.constant 0 : index
    %2 = vector.load %arg5[%c0_2, %c0_3, %c0_4] : memref<1x128x16xbf16, #tpu.memory_space<vmem>>, vector<1x128x16xbf16>
    %3 = vector.shape_cast %2 : vector<1x128x16xbf16> to vector<128x16xbf16>
    %cst = arith.constant dense<0.000000e+00> : vector<64x16xf32>
    %4 = tpu.matmul %1, %3, %cst {dimension_numbers = #tpu.dot_dimension_numbers<[1], [0], [0], [1], [0, 0, 1, 1], [], []>} : vector<64x128xbf16>, vector<128x16xbf16>, vector<64x16xf32> -> vector<64x16xf32>
    %c0_5 = arith.constant 0 : index
    %c0_6 = arith.constant 0 : index
    %5 = vector.load %arg6[%c0_5, %c0_6] : memref<1x16xf32, #tpu.memory_space<vmem>>, vector<1x16xf32>
    %c0_7 = arith.constant 0 : index
    %c0_8 = arith.constant 0 : index
    %6 = vector.load %arg7[%c0_7, %c0_8] : memref<1x16xf32, #tpu.memory_space<vmem>>, vector<1x16xf32>
    %7 = vector.broadcast %5 : vector<1x16xf32> to vector<64x16xf32>
    %8 = arith.mulf %4, %7 : vector<64x16xf32>
    %9 = vector.broadcast %6 : vector<1x16xf32> to vector<64x16xf32>
    %10 = arith.addf %8, %9 : vector<64x16xf32>
    %c0_9 = arith.constant 0 : index
    %c0_10 = arith.constant 0 : index
    %c0_11 = arith.constant 0 : index
    %11 = vector.load %arg8[%c0_9, %c0_10, %c0_11] : memref<1x64x16xf32, #tpu.memory_space<vmem>>, vector<1x64x16xf32>
    %12 = vector.shape_cast %11 : vector<1x64x16xf32> to vector<64x16xf32>
    %13 = vector.shape_cast %10 : vector<64x16xf32> to vector<1x64x16xf32>
    tpu.vector_store %arg8[%c0_9, %c0_10, %c0_11], %13 {strides = array<i32>} : memref<1x64x16xf32, #tpu.memory_space<vmem>>, vector<1x64x16xf32>,
    return
  }
  func.func @transform_0(%arg0: i32, %arg1: i32, %arg2: i32, %arg3: i32) -> (i32, i32, i32) {
    %c0_i32 = arith.constant 0 : i32
    return %arg0, %arg1, %arg3 : i32, i32, i32
  }
  func.func @transform_1(%arg0: i32, %arg1: i32, %arg2: i32, %arg3: i32) -> (i32, i32, i32) {
    %c0_i32 = arith.constant 0 : i32
    return %arg0, %arg3, %arg2 : i32, i32, i32
  }
  func.func @transform_2(%arg0: i32, %arg1: i32, %arg2: i32, %arg3: i32) -> (i32, i32) {
    %c0_i32 = arith.constant 0 : i32
    %c0_i32_0 = arith.constant 0 : i32
    return %c0_i32, %arg2 : i32, i32
  }
  func.func @transform_3(%arg0: i32, %arg1: i32, %arg2: i32, %arg3: i32) -> (i32, i32) {
    %c0_i32 = arith.constant 0 : i32
    %c0_i32_0 = arith.constant 0 : i32
    return %c0_i32, %arg2 : i32, i32
  }
  func.func @transform_4(%arg0: i32, %arg1: i32, %arg2: i32, %arg3: i32) -> (i32, i32, i32) {
    %c0_i32 = arith.constant 0 : i32
    return %arg0, %arg1, %arg2 : i32, i32, i32
  }
}

</mosaic_0001>

<bundles_post_ra>
// kernel: tpu_custom_call.1
= control target key start
LH: loop header
LB: loop body
LE: loop exit
PB: predicated region body
PF: predicated region fallthrough
CT: control target
= control target key end

     0   :  { %vm166_vm0 = vcmask 130048   ;;  %s364_s1 = inlined_call_operand.vmem [shape: bf16[1,128,16], index: 1, kind: input, shape index: {}]   ;;  %s365_s2 = inlined_call_operand.vmem [shape: f32[1,16], index: 2, kind: input, shape index: {}]   ;;  %s366_s3 = inlined_call_operand.vmem [shape: f32[1,16], index: 3, kind: input, shape index: {}]   ;;  %s367_s0 = inlined_call_operand.vmem [shape: bf16[1,64,128], index: 0, kind: input, shape index: {}]   ;;  %s368_s4 = inlined_call_operand.vmem [shape: f32[1,64,16], index: 4, kind: output, shape index: {}]  }
   0x1   :  { %v238_v0 = vld [vmem:[%s364_s1 + $0x38] sm:$0xff]  ;;  %v237_v1 = vld [vmem:[%s364_s1 + $0x30] sm:$0xff]  ;;  %v236_v2 = vld [vmem:[%s364_s1 + $0x28] sm:$0xff] }
   0x2   :  { %113 = vmatpush.bf16.msra.mxu0 %v238_v0  ;;  %239 = vmatpush.bf16.msra.mxu1 %v238_v0  ;;  %v235_v3 = vld [vmem:[%s364_s1 + $0x20] sm:$0xff]  ;;  %v234_v4 = vld [vmem:[%s364_s1 + $0x18] sm:$0xff]  ;;  %v233_v5 = vld [vmem:[%s364_s1 + $0x10] sm:$0xff] }
   0x3   :  { %240 = vmatpush.bf16.msra.mxu2 %v238_v0  ;;  %241 = vmatpush.bf16.msra.mxu3 %v238_v0  ;;  %v232_v6 = vld [vmem:[%s364_s1 + $0x8] sm:$0xff]  ;;  %v231_v7 = vld [vmem:[%s364_s1] sm:$0xff]  ;;  %v229_v10 = vld [vmem:[%s367_s0 + $0x10] sm:$0xff] }
   0x4   :  { %v227_v8 = vld [vmem:[%s367_s0] sm:$0xff]  ;;  %v228_v9 = vld [vmem:[%s367_s0 + $0x8] sm:$0xff]  ;;  %v230_v11 = vld [vmem:[%s367_s0 + $0x18] sm:$0xff] }
   0x5   :  { %v263_v12 = vld [vmem:[%s365_s2] ss:$0 sm:$0xff] }
   0x6   :  { %114 = vmatpush.bf16.msra.mxu0 %v237_v1  ;;  %242 = vmatpush.bf16.msra.mxu1 %v237_v1  ;;  %v264_v13 = vld [vmem:[%s366_s3] ss:$0 sm:$0xff] }
   0x7   :  { %243 = vmatpush.bf16.msra.mxu2 %v237_v1  ;;  %244 = vmatpush.bf16.msra.mxu3 %v237_v1 }
   0xa   :  { %115 = vmatpush.bf16.msra.mxu0 %v236_v2  ;;  %245 = vmatpush.bf16.msra.mxu1 %v236_v2 }
   0xb   :  { %246 = vmatpush.bf16.msra.mxu2 %v236_v2  ;;  %247 = vmatpush.bf16.msra.mxu3 %v236_v2 }
   0xe   :  { %116 = vmatpush.bf16.msra.mxu0 %v235_v3  ;;  %248 = vmatpush.bf16.msra.mxu1 %v235_v3 }
   0xf   :  { %249 = vmatpush.bf16.msra.mxu2 %v235_v3  ;;  %250 = vmatpush.bf16.msra.mxu3 %v235_v3 }
  0x12   :  { %117 = vmatpush.bf16.msra.mxu0 %v234_v4  ;;  %251 = vmatpush.bf16.msra.mxu1 %v234_v4 }
  0x13   :  { %252 = vmatpush.bf16.msra.mxu2 %v234_v4  ;;  %253 = vmatpush.bf16.msra.mxu3 %v234_v4 }
  0x16   :  { %118 = vmatpush.bf16.msra.mxu0 %v233_v5  ;;  %254 = vmatpush.bf16.msra.mxu1 %v233_v5 }
  0x17   :  { %255 = vmatpush.bf16.msra.mxu2 %v233_v5  ;;  %256 = vmatpush.bf16.msra.mxu3 %v233_v5 }
  0x1a   :  { %119 = vmatpush.bf16.msra.mxu0 %v232_v6  ;;  %257 = vmatpush.bf16.msra.mxu1 %v232_v6 }
  0x1b   :  { %258 = vmatpush.bf16.msra.mxu2 %v232_v6  ;;  %259 = vmatpush.bf16.msra.mxu3 %v232_v6 }
  0x1e   :  { %120 = vmatpush.bf16.msra.mxu0 %v231_v7  ;;  %260 = vmatpush.bf16.msra.mxu1 %v231_v7 }
  0x1f   :  { %261 = vmatpush.bf16.msra.mxu2 %v231_v7  ;;  %262 = vmatpush.bf16.msra.mxu3 %v231_v7 }
  0x21   :  { %121 = vmatmul.bf16.vlgmr.msra.gmra.mxu0 %v227_v8  ;;  %126 = vmatmul.bf16.vlgmr.msra.gmra.mxu1 %v228_v9 }
  0x22   :  { %131 = vmatmul.bf16.vlgmr.msra.gmra.mxu2 %v229_v10  ;;  %136 = vmatmul.bf16.vlgmr.msra.gmra.mxu3 %v230_v11 }
  0x9e   :  { %v122_v14 = vpop.f32.mrf.mxu0  ;;  %v127_v15 = vpop.f32.mrf.mxu1 }
  0x9f   :  { %v147_v16 = vmul.f32 %v263_v12, %v122_v14  ;;  %v149_v17 = vmul.f32 %v263_v12, %v127_v15 }
  0xa1   :  { %v158_v18 = vadd.f32 %v264_v13, %v147_v16  ;;  %v160_v19 = vadd.f32 %v264_v13, %v149_v17 }
  0xa3   :  { %167 = vst.msk [vmem:[%s368_s4] sm:$0xff] %vm166_vm0, %v158_v18 }
  0xa4   :  { %169 = vst.msk [vmem:[%s368_s4 + $0x10] sm:$0xff] %vm166_vm0, %v160_v19 }
  0xa5   :  { %v132_v20 = vpop.f32.mrf.mxu2  ;;  %v137_v21 = vpop.f32.mrf.mxu3 }
  0xa6   :  { %v151_v22 = vmul.f32 %v263_v12, %v132_v20  ;;  %v153_v23 = vmul.f32 %v263_v12, %v137_v21  ;;  %v124_v24 = vpop.f32.mrf.mxu0  ;;  %v129_v25 = vpop.f32.mrf.mxu1 }
  0xa7   :  { %v148_v26 = vmul.f32 %v263_v12, %v124_v24  ;;  %v150_v27 = vmul.f32 %v263_v12, %v129_v25 }
  0xa8   :  { %v162_v28 = vadd.f32 %v264_v13, %v151_v22  ;;  %v164_v29 = vadd.f32 %v264_v13, %v153_v23 }
  0xa9   :  { %v159_v30 = vadd.f32 %v264_v13, %v148_v26  ;;  %v161_v31 = vadd.f32 %v264_v13, %v150_v27 }
  0xaa   :  { %171 = vst.msk [vmem:[%s368_s4 + $0x20] sm:$0xff] %vm166_vm0, %v162_v28 }
  0xab   :  { %173 = vst.msk [vmem:[%s368_s4 + $0x30] sm:$0xff] %vm166_vm0, %v164_v29 }
  0xac   :  { %168 = vst.msk [vmem:[%s368_s4 + $0x8] sm:$0xff] %vm166_vm0, %v159_v30 }
  0xad   :  { %170 = vst.msk [vmem:[%s368_s4 + $0x18] sm:$0xff] %vm166_vm0, %v161_v31  ;;  %v134_v32 = vpop.f32.mrf.mxu2  ;;  %v139_v33 = vpop.f32.mrf.mxu3 }
  0xae   :  { %v152_v34 = vmul.f32 %v263_v12, %v134_v32  ;;  %v154_v35 = vmul.f32 %v263_v12, %v139_v33 }
  0xb0   :  { %v163_v36 = vadd.f32 %v264_v13, %v152_v34  ;;  %v165_v37 = vadd.f32 %v264_v13, %v154_v35 }
  0xb2   :  { %172 = vst.msk [vmem:[%s368_s4 + $0x28] sm:$0xff] %vm166_vm0, %v163_v36 }
  0xb3   :  { %174 = vst.msk [vmem:[%s368_s4 + $0x38] sm:$0xff] %vm166_vm0, %v165_v37 }

</bundles_post_ra>
